<compile_context>
chip_gen: v5e
topology: v5e:2x2
jax: 0.10.0
libtpu: 0.0.40
codegen_flags: <defaults>
</compile_context>

<pallas_src>
import functools

import jax
import jax.numpy as jnp
from jax.experimental import pallas as pl
from jax.experimental.pallas import tpu as pltpu


# Slab layout indices
_W1A, _W1B, _W2A, _W2B, _WH1, _WH2, _WHB = range(7)
_B1A, _B1B, _B2A, _B2B, _BHA, _BHB = range(6)


def _round_up(x, m):
    return ((x + m - 1) // m) * m


def mmdl_kernel(x_ref, w_ref, b_ref, out_ref):
    """x_ref: (2, TB, D)  w_ref: (7, D, D)  b_ref: (6, 8, D)  out_ref: (TB, D)."""
    f32 = jnp.float32

    x1 = x_ref[0]                       # (TB, D) modality 0, zero-padded lanes
    x2 = x_ref[1]                       # (TB, D) modality 1, zero-padded lanes

    # biases: all 8 sublanes identical -> take one row, broadcast in the add
    b1a = b_ref[_B1A][0:1, :]
    b1b = b_ref[_B1B][0:1, :]
    b2a = b_ref[_B2A][0:1, :]
    b2b = b_ref[_B2B][0:1, :]
    bha = b_ref[_BHA][0:1, :]
    bhb = b_ref[_BHB][0:1, :]

    # ---- encoder 0: Linear -> ReLU -> Linear ----
    h1 = jnp.maximum(jnp.dot(x1, w_ref[_W1A], preferred_element_type=f32) + b1a, 0.0)
    e1 = jnp.dot(h1, w_ref[_W1B], preferred_element_type=f32) + b1b

    # ---- encoder 1: Linear -> ReLU -> Linear ----
    h2 = jnp.maximum(jnp.dot(x2, w_ref[_W2A], preferred_element_type=f32) + b2a, 0.0)
    e2 = jnp.dot(h2, w_ref[_W2B], preferred_element_type=f32) + b2b

    # ---- fusion (Concat) + head first Linear, fused as split-weight sum ----
    hh = (jnp.dot(e1, w_ref[_WH1], preferred_element_type=f32)
          + jnp.dot(e2, w_ref[_WH2], preferred_element_type=f32)
          + bha)
    hh = jnp.maximum(hh, 0.0)

    # ---- head second Linear (lane-dense padded output) ----
    out_ref[...] = jnp.dot(hh, w_ref[_WHB], preferred_element_type=f32) + bhb


def pack_params(params, dims):
    """Pack the 12 MMDL parameters into two padded VMEM slabs.  Call ONCE at init."""
    dim1, dim2, hid, enc_out, n_cls = dims
    (w1a, b1a, w1b, b1b, w2a, b2a, w2b, b2b, wha, bha, whb, bhb) = params

    d_pad = _round_up(max(dim1, dim2, hid, enc_out, n_cls), 128)

    # split the head's first-layer weight per modality once (exact concat fusion)
    wh1 = wha[:enc_out, :]
    wh2 = wha[enc_out:, :]

    def pad_w(w):
        r, c = w.shape
        return jnp.pad(w.astype(jnp.float32), ((0, d_pad - r), (0, d_pad - c)))

    def pad_b(b):
        b = b.astype(jnp.float32).reshape(1, -1)
        b = jnp.pad(b, ((0, 0), (0, d_pad - b.shape[1])))
        return jnp.broadcast_to(b, (8, d_pad))          # pre-broadcast to 8 sublanes

    w_slab = jnp.stack([pad_w(w1a), pad_w(w1b), pad_w(w2a), pad_w(w2b),
                        pad_w(wh1), pad_w(wh2), pad_w(whb)], axis=0)
    b_slab = jnp.stack([pad_b(b1a), pad_b(b1b), pad_b(b2a), pad_b(b2b),
                        pad_b(bha), pad_b(bhb)], axis=0)
    return (w_slab, b_slab, n_cls)


def mmdl_forward(x1, x2, packed, *, batch_tile=8):
    """Forward pass.  `packed` comes from pack_params (built once, reused every call)."""
    w_slab, b_slab, n_cls = packed
    d_pad = w_slab.shape[-1]
    batch = x1.shape[0]

    tb = batch_tile                                   # multiple of 8; 256-512 for big batches
    batch_pad = _round_up(batch, tb)

    def pad_x(x):
        return jnp.pad(x.astype(jnp.float32),
                       ((0, batch_pad - x.shape[0]), (0, d_pad - x.shape[1])))

    # single lane-dense input slab: (2, batch_pad, d_pad)
    x_slab = jnp.stack([pad_x(x1), pad_x(x2)], axis=0)

    grid = (batch_pad // tb,)
    flops = 2 * 6 * batch_pad * d_pad * d_pad         # 6 padded (TB,D)x(D,D) matmuls
    bytes_accessed = 4 * (x_slab.size + w_slab.size + b_slab.size + batch_pad * d_pad)

    out_padded = pl.pallas_call(
        mmdl_kernel,
        out_shape=jax.ShapeDtypeStruct((batch_pad, d_pad), jnp.float32),
        grid_spec=pltpu.PrefetchScalarGridSpec(
            num_scalar_prefetch=0,
            grid=grid,
            in_specs=[
                # activations: tiled over batch
                pl.BlockSpec((2, tb, d_pad), lambda i: (0, i, 0)),
                # weights / biases: constant block index -> VMEM-resident across grid steps
                pl.BlockSpec((7, d_pad, d_pad), lambda i: (0, 0, 0)),
                pl.BlockSpec((6, 8, d_pad), lambda i: (0, 0, 0)),
            ],
            out_specs=pl.BlockSpec((tb, d_pad), lambda i: (i, 0)),
        ),
        compiler_params=pltpu.CompilerParams(
            dimension_semantics=("parallel",),        # shard batch across TCs on v7x
        ),
        cost_estimate=pl.CostEstimate(
            flops=flops, transcendentals=0, bytes_accessed=bytes_accessed),
    )(x_slab, w_slab, b_slab)

    # strip batch padding and the lane padding of the classifier output
    return out_padded[:batch, :n_cls]


def mmdl_reference(x1, x2, params):
    """Pure-JAX reference mirroring the PyTorch forward."""
    (w1a, b1a, w1b, b1b, w2a, b2a, w2b, b2b, wha, bha, whb, bhb) = params
    e1 = jnp.maximum(x1 @ w1a + b1a, 0.0) @ w1b + b1b
    e2 = jnp.maximum(x2 @ w2a + b2a, 0.0) @ w2b + b2b
    fused = jnp.concatenate([e1, e2], axis=-1)          # Concat fusion
    hh = jnp.maximum(fused @ wha + bha, 0.0)
    return hh @ whb + bhb


def init_params(key, dim1, dim2, hid, enc_out, n_cls):
    ks = jax.random.split(key, 12)

    def lin(k, fan_in, fan_out):
        bound = 1.0 / jnp.sqrt(fan_in)
        return jax.random.uniform(k, (fan_in, fan_out), jnp.float32, -bound, bound)

    w1a = lin(ks[0], dim1, hid);        b1a = jnp.zeros((1, hid), jnp.float32)
    w1b = lin(ks[1], hid, enc_out);     b1b = jnp.zeros((1, enc_out), jnp.float32)
    w2a = lin(ks[2], dim2, hid);        b2a = jnp.zeros((1, hid), jnp.float32)
    w2b = lin(ks[3], hid, enc_out);     b2b = jnp.zeros((1, enc_out), jnp.float32)
    wha = lin(ks[4], 2 * enc_out, hid); bha = jnp.zeros((1, hid), jnp.float32)
    whb = lin(ks[5], hid, n_cls);       bhb = jnp.zeros((1, n_cls), jnp.float32)
    b1a = b1a + 0.01 * jax.random.normal(ks[6], b1a.shape)
    b1b = b1b + 0.01 * jax.random.normal(ks[7], b1b.shape)
    b2a = b2a + 0.01 * jax.random.normal(ks[8], b2a.shape)
    b2b = b2b + 0.01 * jax.random.normal(ks[9], b2b.shape)
    bha = bha + 0.01 * jax.random.normal(ks[10], bha.shape)
    bhb = bhb + 0.01 * jax.random.normal(ks[11], bhb.shape)
    return (w1a, b1a, w1b, b1b, w2a, b2a, w2b, b2b, wha, bha, whb, bhb)


if __name__ == "__main__":
    key = jax.random.PRNGKey(0)
    k_x1, k_x2, k_p = jax.random.split(key, 3)

    # small shapes consistent with the synthetic MMDL setup:
    # 2 modalities, batch=8, modality dims 16 / 32, hidden=32, enc_out=32, 8 classes
    batch, dim1, dim2, hid, enc_out, n_cls = 8, 16, 32, 32, 32, 8

    x1 = jax.random.normal(k_x1, (batch, dim1), jnp.float32)
    x2 = jax.random.normal(k_x2, (batch, dim2), jnp.float32)
    params = init_params(k_p, dim1, dim2, hid, enc_out, n_cls)

    # pack weights/biases into two VMEM slabs ONCE (not per forward call)
    packed = pack_params(params, (dim1, dim2, hid, enc_out, n_cls))

    fwd = jax.jit(functools.partial(mmdl_forward, packed=packed, batch_tile=8))
    out = jax.block_until_ready(fwd(x1, x2))

    ref = mmdl_reference(x1, x2, params)
    assert out.shape == (batch, n_cls)
    assert jnp.allclose(out, ref, atol=1e-5, rtol=1e-5), "mismatch vs reference"

    # TODO(synk): has_padding=True (variable-length sequence) path of MMDL is not implemented;
    # the PID synthetic setup uses has_padding=False.

    print("KERNEL_OK")
</pallas_src>

<mosaic_0001>
module attributes {stable_mosaic.version = 11 : i64} {
  func.func @mmdl_kernel(%arg0: i32, %arg1: memref<2x8x128xf32, #tpu.memory_space<vmem>>, %arg2: memref<7x128x128xf32, #tpu.memory_space<vmem>>, %arg3: memref<6x8x128xf32, #tpu.memory_space<vmem>>, %arg4: memref<8x128xf32, #tpu.memory_space<vmem>>) attributes {dimension_semantics = [#tpu.dimension_semantics<parallel>], iteration_bounds = array<i64: 1>, scalar_prefetch = 0 : i64, scratch_operands = 0 : i64, tpu.core_type = #tpu.core_type<tc>, window_params = [{transform_indices = @transform_0, window_bounds = array<i64: 2, 8, 128>}, {pipeline_mode = #tpu.pipeline_mode<synchronous>, transform_indices = @transform_1, window_bounds = array<i64: 7, 128, 128>}, {pipeline_mode = #tpu.pipeline_mode<synchronous>, transform_indices = @transform_2, window_bounds = array<i64: 6, 8, 128>}, {transform_indices = @transform_3, window_bounds = array<i64: 8, 128>}]} {
    %c0 = arith.constant 0 : index
    %c0_0 = arith.constant 0 : index
    %c0_1 = arith.constant 0 : index
    %0 = vector.load %arg1[%c0, %c0_0, %c0_1] : memref<2x8x128xf32, #tpu.memory_space<vmem>>, vector<1x8x128xf32>
    %1 = vector.shape_cast %0 : vector<1x8x128xf32> to vector<8x128xf32>
    %c1 = arith.constant 1 : index
    %c0_2 = arith.constant 0 : index
    %c0_3 = arith.constant 0 : index
    %2 = vector.load %arg1[%c1, %c0_2, %c0_3] : memref<2x8x128xf32, #tpu.memory_space<vmem>>, vector<1x8x128xf32>
    %3 = vector.shape_cast %2 : vector<1x8x128xf32> to vector<8x128xf32>
    %c0_4 = arith.constant 0 : index
    %c0_5 = arith.constant 0 : index
    %c0_6 = arith.constant 0 : index
    %4 = vector.load %arg3[%c0_4, %c0_5, %c0_6] : memref<6x8x128xf32, #tpu.memory_space<vmem>>, vector<1x8x128xf32>
    %5 = vector.shape_cast %4 : vector<1x8x128xf32> to vector<8x128xf32>
    %6 = vector.extract_strided_slice %5 {offsets = [0, 0], sizes = [1, 128], strides = [1, 1]} : vector<8x128xf32> to vector<1x128xf32>
    %c1_7 = arith.constant 1 : index
    %c0_8 = arith.constant 0 : index
    %c0_9 = arith.constant 0 : index
    %7 = vector.load %arg3[%c1_7, %c0_8, %c0_9] : memref<6x8x128xf32, #tpu.memory_space<vmem>>, vector<1x8x128xf32>
    %8 = vector.shape_cast %7 : vector<1x8x128xf32> to vector<8x128xf32>
    %9 = vector.extract_strided_slice %8 {offsets = [0, 0], sizes = [1, 128], strides = [1, 1]} : vector<8x128xf32> to vector<1x128xf32>
    %c2 = arith.constant 2 : index
    %c0_10 = arith.constant 0 : index
    %c0_11 = arith.constant 0 : index
    %10 = vector.load %arg3[%c2, %c0_10, %c0_11] : memref<6x8x128xf32, #tpu.memory_space<vmem>>, vector<1x8x128xf32>
    %11 = vector.shape_cast %10 : vector<1x8x128xf32> to vector<8x128xf32>
    %12 = vector.extract_strided_slice %11 {offsets = [0, 0], sizes = [1, 128], strides = [1, 1]} : vector<8x128xf32> to vector<1x128xf32>
    %c3 = arith.constant 3 : index
    %c0_12 = arith.constant 0 : index
    %c0_13 = arith.constant 0 : index
    %13 = vector.load %arg3[%c3, %c0_12, %c0_13] : memref<6x8x128xf32, #tpu.memory_space<vmem>>, vector<1x8x128xf32>
    %14 = vector.shape_cast %13 : vector<1x8x128xf32> to vector<8x128xf32>
    %15 = vector.extract_strided_slice %14 {offsets = [0, 0], sizes = [1, 128], strides = [1, 1]} : vector<8x128xf32> to vector<1x128xf32>
    %c4 = arith.constant 4 : index
    %c0_14 = arith.constant 0 : index
    %c0_15 = arith.constant 0 : index
    %16 = vector.load %arg3[%c4, %c0_14, %c0_15] : memref<6x8x128xf32, #tpu.memory_space<vmem>>, vector<1x8x128xf32>
    %17 = vector.shape_cast %16 : vector<1x8x128xf32> to vector<8x128xf32>
    %18 = vector.extract_strided_slice %17 {offsets = [0, 0], sizes = [1, 128], strides = [1, 1]} : vector<8x128xf32> to vector<1x128xf32>
    %c5 = arith.constant 5 : index
    %c0_16 = arith.constant 0 : index
    %c0_17 = arith.constant 0 : index
    %19 = vector.load %arg3[%c5, %c0_16, %c0_17] : memref<6x8x128xf32, #tpu.memory_space<vmem>>, vector<1x8x128xf32>
    %20 = vector.shape_cast %19 : vector<1x8x128xf32> to vector<8x128xf32>
    %21 = vector.extract_strided_slice %20 {offsets = [0, 0], sizes = [1, 128], strides = [1, 1]} : vector<8x128xf32> to vector<1x128xf32>
    %c0_18 = arith.constant 0 : index
    %c0_19 = arith.constant 0 : index
    %c0_20 = arith.constant 0 : index
    %22 = vector.load %arg2[%c0_18, %c0_19, %c0_20] : memref<7x128x128xf32, #tpu.memory_space<vmem>>, vector<1x128x128xf32>
    %23 = vector.shape_cast %22 : vector<1x128x128xf32> to vector<128x128xf32>
    %cst = arith.constant dense<0.000000e+00> : vector<8x128xf32>
    %24 = tpu.matmul %1, %23, %cst {dimension_numbers = #tpu.dot_dimension_numbers<[1], [0], [0], [1], [0, 0, 1, 1], [], []>} : vector<8x128xf32>, vector<128x128xf32>, vector<8x128xf32> -> vector<8x128xf32>
    %25 = vector.broadcast %6 : vector<1x128xf32> to vector<8x128xf32>
    %26 = arith.addf %24, %25 : vector<8x128xf32>
    %cst_21 = arith.constant 0.000000e+00 : f32
    %27 = vector.broadcast %cst_21 : f32 to vector<8x128xf32>
    %28 = arith.maximumf %26, %27 : vector<8x128xf32>
    %c1_22 = arith.constant 1 : index
    %c0_23 = arith.constant 0 : index
    %c0_24 = arith.constant 0 : index
    %29 = vector.load %arg2[%c1_22, %c0_23, %c0_24] : memref<7x128x128xf32, #tpu.memory_space<vmem>>, vector<1x128x128xf32>
    %30 = vector.shape_cast %29 : vector<1x128x128xf32> to vector<128x128xf32>
    %cst_25 = arith.constant dense<0.000000e+00> : vector<8x128xf32>
    %31 = tpu.matmul %28, %30, %cst_25 {dimension_numbers = #tpu.dot_dimension_numbers<[1], [0], [0], [1], [0, 0, 1, 1], [], []>} : vector<8x128xf32>, vector<128x128xf32>, vector<8x128xf32> -> vector<8x128xf32>
    %32 = vector.broadcast %9 : vector<1x128xf32> to vector<8x128xf32>
    %33 = arith.addf %31, %32 : vector<8x128xf32>
    %c2_26 = arith.constant 2 : index
    %c0_27 = arith.constant 0 : index
    %c0_28 = arith.constant 0 : index
    %34 = vector.load %arg2[%c2_26, %c0_27, %c0_28] : memref<7x128x128xf32, #tpu.memory_space<vmem>>, vector<1x128x128xf32>
    %35 = vector.shape_cast %34 : vector<1x128x128xf32> to vector<128x128xf32>
    %cst_29 = arith.constant dense<0.000000e+00> : vector<8x128xf32>
    %36 = tpu.matmul %3, %35, %cst_29 {dimension_numbers = #tpu.dot_dimension_numbers<[1], [0], [0], [1], [0, 0, 1, 1], [], []>} : vector<8x128xf32>, vector<128x128xf32>, vector<8x128xf32> -> vector<8x128xf32>
    %37 = vector.broadcast %12 : vector<1x128xf32> to vector<8x128xf32>
    %38 = arith.addf %36, %37 : vector<8x128xf32>
    %cst_30 = arith.constant 0.000000e+00 : f32
    %39 = vector.broadcast %cst_30 : f32 to vector<8x128xf32>
    %40 = arith.maximumf %38, %39 : vector<8x128xf32>
    %c3_31 = arith.constant 3 : index
    %c0_32 = arith.constant 0 : index
    %c0_33 = arith.constant 0 : index
    %41 = vector.load %arg2[%c3_31, %c0_32, %c0_33] : memref<7x128x128xf32, #tpu.memory_space<vmem>>, vector<1x128x128xf32>
    %42 = vector.shape_cast %41 : vector<1x128x128xf32> to vector<128x128xf32>
    %cst_34 = arith.constant dense<0.000000e+00> : vector<8x128xf32>
    %43 = tpu.matmul %40, %42, %cst_34 {dimension_numbers = #tpu.dot_dimension_numbers<[1], [0], [0], [1], [0, 0, 1, 1], [], []>} : vector<8x128xf32>, vector<128x128xf32>, vector<8x128xf32> -> vector<8x128xf32>
    %44 = vector.broadcast %15 : vector<1x128xf32> to vector<8x128xf32>
    %45 = arith.addf %43, %44 : vector<8x128xf32>
    %c4_35 = arith.constant 4 : index
    %c0_36 = arith.constant 0 : index
    %c0_37 = arith.constant 0 : index
    %46 = vector.load %arg2[%c4_35, %c0_36, %c0_37] : memref<7x128x128xf32, #tpu.memory_space<vmem>>, vector<1x128x128xf32>
    %47 = vector.shape_cast %46 : vector<1x128x128xf32> to vector<128x128xf32>
    %cst_38 = arith.constant dense<0.000000e+00> : vector<8x128xf32>
    %48 = tpu.matmul %33, %47, %cst_38 {dimension_numbers = #tpu.dot_dimension_numbers<[1], [0], [0], [1], [0, 0, 1, 1], [], []>} : vector<8x128xf32>, vector<128x128xf32>, vector<8x128xf32> -> vector<8x128xf32>
    %c5_39 = arith.constant 5 : index
    %c0_40 = arith.constant 0 : index
    %c0_41 = arith.constant 0 : index
    %49 = vector.load %arg2[%c5_39, %c0_40, %c0_41] : memref<7x128x128xf32, #tpu.memory_space<vmem>>, vector<1x128x128xf32>
    %50 = vector.shape_cast %49 : vector<1x128x128xf32> to vector<128x128xf32>
    %cst_42 = arith.constant dense<0.000000e+00> : vector<8x128xf32>
    %51 = tpu.matmul %45, %50, %cst_42 {dimension_numbers = #tpu.dot_dimension_numbers<[1], [0], [0], [1], [0, 0, 1, 1], [], []>} : vector<8x128xf32>, vector<128x128xf32>, vector<8x128xf32> -> vector<8x128xf32>
    %52 = arith.addf %48, %51 : vector<8x128xf32>
    %53 = vector.broadcast %18 : vector<1x128xf32> to vector<8x128xf32>
    %54 = arith.addf %52, %53 : vector<8x128xf32>
    %cst_43 = arith.constant 0.000000e+00 : f32
    %55 = vector.broadcast %cst_43 : f32 to vector<8x128xf32>
    %56 = arith.maximumf %54, %55 : vector<8x128xf32>
    %c6 = arith.constant 6 : index
    %c0_44 = arith.constant 0 : index
    %c0_45 = arith.constant 0 : index
    %57 = vector.load %arg2[%c6, %c0_44, %c0_45] : memref<7x128x128xf32, #tpu.memory_space<vmem>>, vector<1x128x128xf32>
    %58 = vector.shape_cast %57 : vector<1x128x128xf32> to vector<128x128xf32>
    %cst_46 = arith.constant dense<0.000000e+00> : vector<8x128xf32>
    %59 = tpu.matmul %56, %58, %cst_46 {dimension_numbers = #tpu.dot_dimension_numbers<[1], [0], [0], [1], [0, 0, 1, 1], [], []>} : vector<8x128xf32>, vector<128x128xf32>, vector<8x128xf32> -> vector<8x128xf32>
    %60 = vector.broadcast %21 : vector<1x128xf32> to vector<8x128xf32>
    %61 = arith.addf %59, %60 : vector<8x128xf32>
    %c0_47 = arith.constant 0 : index
    %c0_48 = arith.constant 0 : index
    %62 = vector.load %arg4[%c0_47, %c0_48] : memref<8x128xf32, #tpu.memory_space<vmem>>, vector<8x128xf32>
    tpu.vector_store %arg4[%c0_47, %c0_48], %61 {strides = array<i32>} : memref<8x128xf32, #tpu.memory_space<vmem>>, vector<8x128xf32>,
    return
  }
  func.func @transform_0(%arg0: i32) -> (i32, i32, i32) {
    %c0_i32 = arith.constant 0 : i32
    %c0_i32_0 = arith.constant 0 : i32
    %c0_i32_1 = arith.constant 0 : i32
    return %c0_i32, %arg0, %c0_i32_0 : i32, i32, i32
  }
  func.func @transform_1(%arg0: i32) -> (i32, i32, i32) {
    %c0_i32 = arith.constant 0 : i32
    %c0_i32_0 = arith.constant 0 : i32
    %c0_i32_1 = arith.constant 0 : i32
    %c0_i32_2 = arith.constant 0 : i32
    return %c0_i32, %c0_i32_0, %c0_i32_1 : i32, i32, i32
  }
  func.func @transform_2(%arg0: i32) -> (i32, i32, i32) {
    %c0_i32 = arith.constant 0 : i32
    %c0_i32_0 = arith.constant 0 : i32
    %c0_i32_1 = arith.constant 0 : i32
    %c0_i32_2 = arith.constant 0 : i32
    return %c0_i32, %c0_i32_0, %c0_i32_1 : i32, i32, i32
  }
  func.func @transform_3(%arg0: i32) -> (i32, i32) {
    %c0_i32 = arith.constant 0 : i32
    %c0_i32_0 = arith.constant 0 : i32
    return %arg0, %c0_i32 : i32, i32
  }
}

</mosaic_0001>

<bundles_post_ra>
// kernel: mmdl_forward.1
= control target key start
LH: loop header
LB: loop body
LE: loop exit
PB: predicated region body
PF: predicated region fallthrough
CT: control target
= control target key end

     0   :  { %8 = vsyncpa [#allocation3], 0  ;;  %s447_s0 = inlined_call_operand.vmem [shape: f32[2,8,128], index: 0, kind: input, shape index: {}]   ;;  %s448_s1 = inlined_call_operand.hbm [shape: f32[7,128,128], index: 1, kind: input, shape index: {}]   ;;  %s449_s2 = inlined_call_operand.vmem [shape: f32[6,8,128], index: 2, kind: input, shape index: {}]   ;;  %s450_s3 = inlined_call_operand.hbm [shape: f32[8,128], index: 3, kind: output, shape index: {}]  }
   0x1   :  { %9 = vsyncpa [#allocation4], 0  ;;  %s16_s14 = sshll.u32 %s448_s1, 4  ;;  %s393_s15 = smov [#allocation2]   ;;  %s17_s14 = int_to_ptr.hbm [resolvable:$true] %s16_s14 }
   0x2   :  { %s18_s16 = sshll.u32 %s393_s15, 4  ;;  %s394_s17 = smov 128   ;;  %s19_s16 = int_to_ptr.vmem [resolvable:$true] %s18_s16 }
   0x3   :  { %s395_s18 = smov 8  }
   0x4   :  { %24 = dma.hbm_to_vmem [thread:$0]  %s17_s14, 14336, %s19_s16, [#allocation3], %s394_s17, %s394_s17, %s395_s18  }
   0x5   :  { %389 = dma.done.wait [#allocation3], 14336  }
   0x6   :  { %390 = vsyncadd [#allocation3], 4294952960  ;;  %v137_v0 = vld [vmem:[#allocation2 + $0x178] sm:$0xff]  ;;  %v136_v1 = vld [vmem:[#allocation2 + $0x170] sm:$0xff]  ;;  %s396_s6 = smov [#allocation5]   ;;  %s321_s10 = sshll.u32 %s450_s3, 4  ;;  %s322_s10 = int_to_ptr.hbm [resolvable:$true] %s321_s10 }
   0x7   :  { %139 = vmatpush.msra.mxu2 %v137_v0  ;;  %v135_v2 = vld [vmem:[#allocation2 + $0x168] sm:$0xff]  ;;  %v60_v3 = vld [vmem:[#allocation2 + $0x78] sm:$0xff]  ;;  %v59_v4 = vld [vmem:[#allocation2 + $0x70] sm:$0xff]  ;;  %s319_s7 = sshll.u32 %s396_s6, 4  ;;  %s320_s7 = int_to_ptr.vmem [resolvable:$true] %s319_s7 }
   0x8   :  { %62 = vmatpush.msra.mxu0 %v60_v3  ;;  %v134_v5 = vld [vmem:[#allocation2 + $0x160] sm:$0xff]  ;;  %v58_v6 = vld [vmem:[#allocation2 + $0x68] sm:$0xff]  ;;  %v133_v7 = vld [vmem:[#allocation2 + $0x158] sm:$0xff] }
   0x9   :  { %140 = vmatpush.msra.mxu2 %v136_v1  ;;  %v57_v8 = vld [vmem:[#allocation2 + $0x60] sm:$0xff]  ;;  %v132_v9 = vld [vmem:[#allocation2 + $0x150] sm:$0xff]  ;;  %v56_v10 = vld [vmem:[#allocation2 + $0x58] sm:$0xff] }
   0xa   :  { %63 = vmatpush.msra.mxu0 %v59_v4  ;;  %v131_v11 = vld [vmem:[#allocation2 + $0x148] sm:$0xff]  ;;  %v55_v12 = vld [vmem:[#allocation2 + $0x50] sm:$0xff]  ;;  %v176_v13 = vld [vmem:[#allocation2 + $0x1f8] sm:$0xff] }
   0xb   :  { %141 = vmatpush.msra.mxu2 %v135_v2  ;;  %v175_v14 = vld [vmem:[#allocation2 + $0x1f0] sm:$0xff]  ;;  %v130_v15 = vld [vmem:[#allocation2 + $0x140] sm:$0xff]  ;;  %v54_v16 = vld [vmem:[#allocation2 + $0x48] sm:$0xff]  ;;  %178 = vmatpush.msra.mxu3 %v176_v13 }
   0xc   :  { %64 = vmatpush.msra.mxu0 %v58_v6  ;;  %v99_v17 = vld [vmem:[#allocation2 + $0xf8] sm:$0xff]  ;;  %v174_v18 = vld [vmem:[#allocation2 + $0x1e8] sm:$0xff]  ;;  %v98_v19 = vld [vmem:[#allocation2 + $0xf0] sm:$0xff] }
   0xd   :  { %142 = vmatpush.msra.mxu2 %v134_v5  ;;  %v129_v20 = vld [vmem:[#allocation2 + $0x138] sm:$0xff]  ;;  %v53_v21 = vld [vmem:[#allocation2 + $0x40] sm:$0xff]  ;;  %179 = vmatpush.msra.mxu3 %v175_v14  ;;  %v97_v23 = vld [vmem:[#allocation2 + $0xe8] sm:$0xff] }
   0xe   :  { %65 = vmatpush.msra.mxu0 %v57_v8  ;;  %101 = vmatpush.msra.mxu1 %v99_v17  ;;  %v173_v22 = vld [vmem:[#allocation2 + $0x1e0] sm:$0xff]  ;;  %v128_v24 = vld [vmem:[#allocation2 + $0x130] sm:$0xff]  ;;  %v52_v25 = vld [vmem:[#allocation2 + $0x38] sm:$0xff] }
   0xf   :  { %143 = vmatpush.msra.mxu2 %v133_v7  ;;  %180 = vmatpush.msra.mxu3 %v174_v18  ;;  %v172_v26 = vld [vmem:[#allocation2 + $0x1d8] sm:$0xff]  ;;  %v96_v27 = vld [vmem:[#allocation2 + $0xe0] sm:$0xff]  ;;  %v127_v28 = vld [vmem:[#allocation2 + $0x128] sm:$0xff] }
  0x10   :  { %66 = vmatpush.msra.mxu0 %v56_v10  ;;  %102 = vmatpush.msra.mxu1 %v98_v19  ;;  %v51_v29 = vld [vmem:[#allocation2 + $0x30] sm:$0xff]  ;;  %v95_v31 = vld [vmem:[#allocation2 + $0xd8] sm:$0xff]  ;;  %v126_v32 = vld [vmem:[#allocation2 + $0x120] sm:$0xff] }
  0x11   :  { %144 = vmatpush.msra.mxu2 %v132_v9  ;;  %181 = vmatpush.msra.mxu3 %v173_v22  ;;  %v171_v30 = vld [vmem:[#allocation2 + $0x1d0] sm:$0xff]  ;;  %v50_v33 = vld [vmem:[#allocation2 + $0x28] sm:$0xff]  ;;  %v125_v36 = vld [vmem:[#allocation2 + $0x118] sm:$0xff] }
  0x12   :  { %67 = vmatpush.msra.mxu0 %v55_v12  ;;  %103 = vmatpush.msra.mxu1 %v97_v23  ;;  %v170_v34 = vld [vmem:[#allocation2 + $0x1c8] sm:$0xff]  ;;  %v94_v35 = vld [vmem:[#allocation2 + $0xd0] sm:$0xff]  ;;  %v49_v37 = vld [vmem:[#allocation2 + $0x20] sm:$0xff] }
  0x13   :  { %145 = vmatpush.msra.mxu2 %v131_v11  ;;  %182 = vmatpush.msra.mxu3 %v172_v26  ;;  %v169_v38 = vld [vmem:[#allocation2 + $0x1c0] sm:$0xff]  ;;  %v93_v39 = vld [vmem:[#allocation2 + $0xc8] sm:$0xff]  ;;  %v124_v40 = vld [vmem:[#allocation2 + $0x110] sm:$0xff] }
  0x14   :  { %68 = vmatpush.msra.mxu0 %v54_v16  ;;  %104 = vmatpush.msra.mxu1 %v96_v27  ;;  %v48_v41 = vld [vmem:[#allocation2 + $0x18] sm:$0xff]  ;;  %v92_v43 = vld [vmem:[#allocation2 + $0xc0] sm:$0xff]  ;;  %v123_v44 = vld [vmem:[#allocation2 + $0x108] sm:$0xff] }
  0x15   :  { %146 = vmatpush.msra.mxu2 %v130_v15  ;;  %183 = vmatpush.msra.mxu3 %v171_v30  ;;  %v168_v42 = vld [vmem:[#allocation2 + $0x1b8] sm:$0xff]  ;;  %v47_v45 = vld [vmem:[#allocation2 + $0x10] sm:$0xff]  ;;  %v122_v48 = vld [vmem:[#allocation2 + $0x100] sm:$0xff] }
  0x16   :  { %69 = vmatpush.msra.mxu0 %v53_v21  ;;  %105 = vmatpush.msra.mxu1 %v95_v31  ;;  %v167_v46 = vld [vmem:[#allocation2 + $0x1b0] sm:$0xff]  ;;  %v91_v47 = vld [vmem:[#allocation2 + $0xb8] sm:$0xff]  ;;  %v46_v49 = vld [vmem:[#allocation2 + $0x8] sm:$0xff] }
  0x17   :  { %147 = vmatpush.msra.mxu2 %v129_v20  ;;  %184 = vmatpush.msra.mxu3 %v170_v34  ;;  %v331_v50 = vld [vmem:[%s447_s0 + $0x8] sm:$0xff]  ;;  %v45_v52 = vld [vmem:[#allocation2] sm:$0xff]  ;;  %v90_v53 = vld [vmem:[#allocation2 + $0xb0] sm:$0xff] }
  0x18   :  { %70 = vmatpush.msra.mxu0 %v52_v25  ;;  %106 = vmatpush.msra.mxu1 %v94_v35  ;;  %v166_v51 = vld [vmem:[#allocation2 + $0x1a8] sm:$0xff]  ;;  %v31_v54 = vld [vmem:[%s447_s0] sm:$0xff]  ;;  %v164_v57 = vld [vmem:[#allocation2 + $0x198] sm:$0xff] }
  0x19   :  { %148 = vmatpush.msra.mxu2 %v128_v24  ;;  %185 = vmatpush.msra.mxu3 %v169_v38  ;;  %v165_v55 = vld [vmem:[#allocation2 + $0x1a0] sm:$0xff]  ;;  %v89_v56 = vld [vmem:[#allocation2 + $0xa8] sm:$0xff]  ;;  %v163_v58 = vld [vmem:[#allocation2 + $0x190] sm:$0xff] }
  0x1a   :  { %71 = vmatpush.msra.mxu0 %v51_v29  ;;  %107 = vmatpush.msra.mxu1 %v93_v39  ;;  %v88_v59 = vld [vmem:[#allocation2 + $0xa0] sm:$0xff]  ;;  %v162_v60 = vld [vmem:[#allocation2 + $0x188] sm:$0xff]  ;;  %v87_v61 = vld [vmem:[#allocation2 + $0x98] sm:$0xff] }
  0x1b   :  { %149 = vmatpush.msra.mxu2 %v127_v28  ;;  %186 = vmatpush.msra.mxu3 %v168_v42  ;;  %v161_v62 = vld [vmem:[#allocation2 + $0x180] sm:$0xff]  ;;  %v86_v63 = vld [vmem:[#allocation2 + $0x90] sm:$0xff]  ;;  %v85_v0 = vld [vmem:[#allocation2 + $0x88] sm:$0xff] }
  0x1c   :  { %72 = vmatpush.msra.mxu0 %v50_v33  ;;  %108 = vmatpush.msra.mxu1 %v92_v43  ;;  %v231_v1 = vld [vmem:[#allocation2 + $0x2f8] sm:$0xff]  ;;  %v230_v2 = vld [vmem:[#allocation2 + $0x2f0] sm:$0xff]  ;;  %v84_v3 = vld [vmem:[#allocation2 + $0x80] sm:$0xff] }
  0x1d   :  { %150 = vmatpush.msra.mxu2 %v126_v32  ;;  %187 = vmatpush.msra.mxu3 %v167_v46  ;;  %v214_v4 = vld [vmem:[#allocation2 + $0x278] sm:$0xff]  ;;  %v229_v5 = vld [vmem:[#allocation2 + $0x2e8] sm:$0xff]  ;;  %v213_v6 = vld [vmem:[#allocation2 + $0x270] sm:$0xff] }
  0x1e   :  { %73 = vmatpush.msra.mxu0 %v49_v37  ;;  %109 = vmatpush.msra.mxu1 %v91_v47  ;;  %v228_v7 = vld [vmem:[#allocation2 + $0x2e0] sm:$0xff]  ;;  %v212_v8 = vld [vmem:[#allocation2 + $0x268] sm:$0xff]  ;;  %v227_v9 = vld [vmem:[#allocation2 + $0x2d8] sm:$0xff] }
  0x1f   :  { %151 = vmatpush.msra.mxu2 %v125_v36  ;;  %188 = vmatpush.msra.mxu3 %v166_v51  ;;  %v211_v10 = vld [vmem:[#allocation2 + $0x260] sm:$0xff]  ;;  %v226_v11 = vld [vmem:[#allocation2 + $0x2d0] sm:$0xff]  ;;  %v210_v12 = vld [vmem:[#allocation2 + $0x258] sm:$0xff] }
  0x20   :  { %74 = vmatpush.msra.mxu0 %v48_v41  ;;  %110 = vmatpush.msra.mxu1 %v90_v53  ;;  %v225_v13 = vld [vmem:[#allocation2 + $0x2c8] sm:$0xff]  ;;  %v209_v14 = vld [vmem:[#allocation2 + $0x250] sm:$0xff]  ;;  %v224_v15 = vld [vmem:[#allocation2 + $0x2c0] sm:$0xff] }
  0x21   :  { %152 = vmatpush.msra.mxu2 %v124_v40  ;;  %189 = vmatpush.msra.mxu3 %v165_v55  ;;  %v208_v16 = vld [vmem:[#allocation2 + $0x248] sm:$0xff]  ;;  %v223_v17 = vld [vmem:[#allocation2 + $0x2b8] sm:$0xff]  ;;  %v34_v18 = vld [vmem:[%s449_s2] sm:$0xff] }
  0x22   :  { %75 = vmatpush.msra.mxu0 %v47_v45  ;;  %111 = vmatpush.msra.mxu1 %v89_v56  ;;  %v207_v19 = vld [vmem:[#allocation2 + $0x240] sm:$0xff]  ;;  %v222_v20 = vld [vmem:[#allocation2 + $0x2b0] sm:$0xff]  ;;  %v206_v21 = vld [vmem:[#allocation2 + $0x238] sm:$0xff]  ;;  %v61_v23 = vperm.slane %v34_v18, 0 }
  0x23   :  { %153 = vmatpush.msra.mxu2 %v123_v44  ;;  %190 = vmatpush.msra.mxu3 %v164_v57  ;;  %v221_v22 = vld [vmem:[#allocation2 + $0x2a8] sm:$0xff]  ;;  %v333_v24 = vld [vmem:[%s449_s2 + $0x10] sm:$0xff]  ;;  %v220_v26 = vld [vmem:[#allocation2 + $0x2a0] sm:$0xff] }
  0x24   :  { %76 = vmatpush.msra.mxu0 %v46_v49  ;;  %112 = vmatpush.msra.mxu1 %v88_v59  ;;  %v205_v25 = vld [vmem:[#allocation2 + $0x230] sm:$0xff]  ;;  %v204_v28 = vld [vmem:[#allocation2 + $0x228] sm:$0xff]  ;;  %v219_v29 = vld [vmem:[#allocation2 + $0x298] sm:$0xff]  ;;  %v138_v30 = vperm.slane %v333_v24, 0 }
  0x25   :  { %154 = vmatpush.msra.mxu2 %v122_v48  ;;  %191 = vmatpush.msra.mxu3 %v163_v58  ;;  %v218_v32 = vld [vmem:[#allocation2 + $0x290] sm:$0xff]  ;;  %v203_v34 = vld [vmem:[#allocation2 + $0x220] sm:$0xff]  ;;  %v202_v37 = vld [vmem:[#allocation2 + $0x218] sm:$0xff] }
  0x26   :  { %155 = vmatmul.f32.vlgmr.msra.gmra.mxu2 %v331_v50  ;;  %77 = vmatpush.msra.mxu0 %v45_v52  ;;  %v201_v39 = vld [vmem:[#allocation2 + $0x210] sm:$0xff]  ;;  %v217_v40 = vld [vmem:[#allocation2 + $0x288] sm:$0xff]  ;;  %v216_v42 = vld [vmem:[#allocation2 + $0x280] sm:$0xff] }
  0x27   :  { %78 = vmatmul.f32.vlgmr.msra.gmra.mxu0 %v31_v54  ;;  %192 = vmatpush.msra.mxu3 %v162_v60  ;;  %v200_v41 = vld [vmem:[#allocation2 + $0x208] sm:$0xff]  ;;  %v199_v43 = vld [vmem:[#allocation2 + $0x200] sm:$0xff]  ;;  %v291_v44 = vld [vmem:[#allocation2 + $0x378] sm:$0xff] }
  0x28   :  { %113 = vmatpush.msra.mxu1 %v87_v61  ;;  %232 = vmatpush.msrb.mxu0 %v231_v1  ;;  %v290_v45 = vld [vmem:[#allocation2 + $0x370] sm:$0xff]  ;;  %v289_v46 = vld [vmem:[#allocation2 + $0x368] sm:$0xff]  ;;  %v288_v47 = vld [vmem:[#allocation2 + $0x360] sm:$0xff] }
  0x29   :  { %193 = vmatpush.msra.mxu3 %v161_v62  ;;  %293 = vmatpush.msrb.mxu2 %v291_v44  ;;  %v287_v48 = vld [vmem:[#allocation2 + $0x358] sm:$0xff]  ;;  %v286_v49 = vld [vmem:[#allocation2 + $0x350] sm:$0xff]  ;;  %v285_v50 = vld [vmem:[#allocation2 + $0x348] sm:$0xff] }
  0x2a   :  { %114 = vmatpush.msra.mxu1 %v86_v63  ;;  %233 = vmatpush.msrb.mxu0 %v230_v2  ;;  %v284_v51 = vld [vmem:[#allocation2 + $0x340] sm:$0xff]  ;;  %v332_v52 = vld [vmem:[%s449_s2 + $0x8] sm:$0xff]  ;;  %v283_v53 = vld [vmem:[#allocation2 + $0x338] sm:$0xff] }
  0x2b   :  { %294 = vmatpush.msrb.mxu2 %v290_v45  ;;  %v100_v54 = vperm.slane %v332_v52, 0  ;;  %v282_v55 = vld [vmem:[#allocation2 + $0x330] sm:$0xff]  ;;  %v281_v56 = vld [vmem:[#allocation2 + $0x328] sm:$0xff]  ;;  %v280_v59 = vld [vmem:[#allocation2 + $0x320] sm:$0xff] }
  0x2c   :  { %115 = vmatpush.msra.mxu1 %v85_v0  ;;  %234 = vmatpush.msrb.mxu0 %v229_v5  ;;  %v334_v60 = vld [vmem:[%s449_s2 + $0x18] sm:$0xff]  ;;  %v278_v1 = vld [vmem:[#allocation2 + $0x310] sm:$0xff]  ;;  %v277_v2 = vld [vmem:[#allocation2 + $0x308] sm:$0xff] }
  0x2d   :  { %295 = vmatpush.msrb.mxu2 %v289_v46  ;;  %v177_v61 = vperm.slane %v334_v60, 0  ;;  %v279_v0 = vld [vmem:[#allocation2 + $0x318] sm:$0xff] }
  0x2e   :  { %116 = vmatpush.msra.mxu1 %v84_v3  ;;  %235 = vmatpush.msrb.mxu0 %v228_v7  ;;  %v276_v3 = vld [vmem:[#allocation2 + $0x300] sm:$0xff] }
  0x2f   :  { %296 = vmatpush.msrb.mxu2 %v288_v47 }
  0x30   :  { %252 = vmatpush.msrb.mxu1 %v214_v4  ;;  %236 = vmatpush.msrb.mxu0 %v227_v9  ;;  %v335_v4 = vld [vmem:[%s449_s2 + $0x20] sm:$0xff] }
  0x31   :  { %297 = vmatpush.msrb.mxu2 %v287_v48 }
  0x32   :  { %253 = vmatpush.msrb.mxu1 %v213_v6  ;;  %237 = vmatpush.msrb.mxu0 %v226_v11  ;;  %v272_v6 = vperm.slane %v335_v4, 0  ;;  %v336_v11 = vld [vmem:[%s449_s2 + $0x28] sm:$0xff] }
  0x33   :  { %298 = vmatpush.msrb.mxu2 %v286_v49 }
  0x34   :  { %254 = vmatpush.msrb.mxu1 %v212_v8  ;;  %238 = vmatpush.msrb.mxu0 %v225_v13 }
  0x35   :  { %299 = vmatpush.msrb.mxu2 %v285_v50 }
  0x36   :  { %255 = vmatpush.msrb.mxu1 %v211_v10  ;;  %239 = vmatpush.msrb.mxu0 %v224_v15 }
  0x37   :  { %300 = vmatpush.msrb.mxu2 %v284_v51 }
  0x38   :  { %256 = vmatpush.msrb.mxu1 %v210_v12  ;;  %240 = vmatpush.msrb.mxu0 %v223_v17  ;;  %v292_v12 = vperm.slane %v336_v11, 0 }
  0x39   :  { %301 = vmatpush.msrb.mxu2 %v283_v53 }
  0x3a   :  { %257 = vmatpush.msrb.mxu1 %v209_v14  ;;  %241 = vmatpush.msrb.mxu0 %v222_v20 }
  0x3b   :  { %302 = vmatpush.msrb.mxu2 %v282_v55 }
  0x3c   :  { %258 = vmatpush.msrb.mxu1 %v208_v16  ;;  %242 = vmatpush.msrb.mxu0 %v221_v22 }
  0x3d   :  { %303 = vmatpush.msrb.mxu2 %v281_v56 }
  0x3e   :  { %259 = vmatpush.msrb.mxu1 %v207_v19  ;;  %243 = vmatpush.msrb.mxu0 %v220_v26 }
  0x3f   :  { %304 = vmatpush.msrb.mxu2 %v280_v59 }
  0x40   :  { %260 = vmatpush.msrb.mxu1 %v206_v21  ;;  %244 = vmatpush.msrb.mxu0 %v219_v29 }
  0x41   :  { %305 = vmatpush.msrb.mxu2 %v279_v0 }
  0x42   :  { %261 = vmatpush.msrb.mxu1 %v205_v25  ;;  %245 = vmatpush.msrb.mxu0 %v218_v32 }
  0x43   :  { %306 = vmatpush.msrb.mxu2 %v278_v1 }
  0x44   :  { %262 = vmatpush.msrb.mxu1 %v204_v28  ;;  %246 = vmatpush.msrb.mxu0 %v217_v40 }
  0x45   :  { %307 = vmatpush.msrb.mxu2 %v277_v2 }
  0x46   :  { %263 = vmatpush.msrb.mxu1 %v203_v34  ;;  %247 = vmatpush.msrb.mxu0 %v216_v42 }
  0x47   :  { %308 = vmatpush.msrb.mxu2 %v276_v3 }
  0x48   :  { %264 = vmatpush.msrb.mxu1 %v202_v37 }
  0x4a   :  { %265 = vmatpush.msrb.mxu1 %v201_v39 }
  0x4c   :  { %266 = vmatpush.msrb.mxu1 %v200_v41 }
  0x4e   :  { %267 = vmatpush.msrb.mxu1 %v199_v43 }
  0xa4   :  { %v79_v27 = vpop.f32.mrf.mxu0 }
  0xa5   :  { %v80_v31 = vadd.f32 %v79_v27, %v61_v23 }
  0xa7   :  { %v82_v33 = vmax.f32 %v80_v31, 0.0 }
  0xa9   :  { %v156_v35 = vpop.f32.mrf.mxu2  ;;  %117 = vmatmul.f32.vlgmr.msra.gmra.mxu1 %v82_v33 }
  0xaa   :  { %v157_v36 = vadd.f32 %v156_v35, %v138_v30 }
  0xac   :  { %v159_v38 = vmax.f32 %v157_v36, 0.0 }
  0xae   :  { %194 = vmatmul.f32.vlgmr.msra.gmra.mxu3 %v159_v38 }
 0x126   :  { %v118_v57 = vpop.f32.mrf.mxu1 }
 0x127   :  { %v119_v58 = vadd.f32 %v118_v57, %v100_v54 }
 0x129   :  { %268 = vmatmul.f32.vlgmr.msrb.gmra.mxu1 %v119_v58 }
 0x131   :  { %v195_v62 = vpop.f32.mrf.mxu3 }
 0x132   :  { %v196_v63 = vadd.f32 %v195_v62, %v177_v61 }
 0x134   :  { %248 = vmatmul.f32.vlgmr.msrb.gmra.mxu0 %v196_v63 }
 0x1a6   :  { %v269_v5 = vpop.f32.mrf.mxu1 }
 0x1b1   :  { %v249_v7 = vpop.f32.mrf.mxu0 }
 0x1b2   :  { %v270_v8 = vadd.f32 %v269_v5, %v249_v7 }
 0x1b4   :  { %v273_v9 = vadd.f32 %v272_v6, %v270_v8 }
 0x1b6   :  { %v274_v10 = vmax.f32 %v273_v9, 0.0 }
 0x1b8   :  { %309 = vmatmul.f32.vlgmr.msrb.gmra.mxu2 %v274_v10 }
 0x23b   :  { %v310_v13 = vpop.f32.mrf.mxu2 }
 0x23c   :  { %v311_v14 = vadd.f32 %v310_v13, %v292_v12 }
 0x23e   :  { %313 = vst [vmem:[#allocation5] sm:$0xff] %v311_v14 }
 0x23f   :  { %324 = dma.vmem_to_hbm [thread:$0]  %s320_s7, 128, %s322_s10, [#allocation4]  }
 0x240   :  { %391 = dma.done.wait [#allocation4], 128  }
 0x241   :  { %392 = vsyncadd [#allocation4], 4294967168 }
 0x242   :  { %329 = vsyncpa [#allocation3], 1 }
 0x243   :  { %330 = vsyncpa [#allocation4], 1 }

</bundles_post_ra>
